<compile_context>
chip_gen: v7x
topology: tpu7x:2x2x1
jax: 0.10.0
libtpu: 0.0.40
codegen_flags: <defaults>
</compile_context>

<pallas_src>
import functools

import jax
import jax.numpy as jnp
from jax import lax
from jax.experimental import pallas as pl
from jax.experimental.pallas import tpu as pltpu

_IN = 2
_H1 = 8
_H2 = 8

_LANES = 128            # vreg lane width
_CR = 8                 # sublane rows per chunk -> one dense (8, 128) vreg per live value
_MAX_TILE_ROWS = 2048   # 2048 rows x 128 lanes = 256K batch elems / step (~6 MiB VMEM dbl-buffered)


def _mlp_kernel(x_ref, w1_ref, b1_ref, w2_ref, b2_ref, w3_ref, b3_ref, o_ref):
    # x_ref: (2, TILE_R, 128) VMEM (batch on sublanes x lanes); o_ref: (TILE_R, 128) VMEM.
    # Weights/biases are tiny -> SMEM; read each scalar once, outside the chunk loop.
    w1 = [[w1_ref[i, j] for j in range(_H1)] for i in range(_IN)]
    b1 = [b1_ref[j] for j in range(_H1)]
    w2 = [[w2_ref[i, j] for j in range(_H2)] for i in range(_H1)]
    b2 = [b2_ref[j] for j in range(_H2)]
    w3 = [w3_ref[i, 0] for i in range(_H2)]
    b3 = b3_ref[0]

    tile_rows = o_ref.shape[0]
    n_chunks = tile_rows // _CR  # static

    def chunk(c, carry):
        r0 = pl.multiple_of(c * _CR, _CR)
        xc = x_ref[:, pl.ds(r0, _CR), :]          # (2, 8, 128): two dense vregs
        x0 = xc[0]                                # (8, 128)
        x1 = xc[1]                                # (8, 128)

        # Layer 1: 2 -> 8, ReLU (all values live in vregs for this chunk)
        h1 = [jnp.maximum(w1[0][j] * x0 + w1[1][j] * x1 + b1[j], 0.0)
              for j in range(_H1)]

        # Layer 2: 8 -> 8, ReLU
        h2 = []
        for j in range(_H2):
            s = h1[0] * w2[0][j]
            for k in range(1, _H1):
                s = s + h1[k] * w2[k][j]
            h2.append(jnp.maximum(s + b2[j], 0.0))

        # Layer 3: 8 -> 1
        out = h2[0] * w3[0]
        for k in range(1, _H2):
            out = out + h2[k] * w3[k]
        out = out + b3

        o_ref[pl.ds(r0, _CR), :] = out.astype(o_ref.dtype)   # dense, unmasked vst
        return carry

    lax.fori_loop(0, n_chunks, chunk, 0, unroll=min(8, n_chunks))


def _round_up(a, b):
    return ((a + b - 1) // b) * b


@functools.partial(jax.jit, static_argnames=("max_tile_rows",))
def circle_model_forward(x, params, *, max_tile_rows=_MAX_TILE_ROWS):
    """x: (N, 2) float32 (torch (batch, features) convention). Returns (N, 1) logits."""
    w1, b1, w2, b2, w3, b3 = params
    n = x.shape[0]

    # Lane/sublane-dense layout: batch -> (rows, 128) so each in-kernel chunk is a full vreg.
    n_min = _round_up(max(n, 1), _CR * _LANES)
    rows = n_min // _LANES
    # Cap the tile so large batches get >= ~4 grid steps (pipelining + both v7x TCs),
    # never below one chunk.  All sizes are static Python ints at trace time.
    tile_rows = min(max_tile_rows, max(_CR, _round_up(pl.cdiv(rows, 4), _CR)))
    rows_pad = _round_up(rows, tile_rows)
    n_pad = rows_pad * _LANES

    # Transpose / pad / reshape stay inside this jit -> fused by XLA, no extra HBM passes.
    x_t = jnp.pad(x.T, ((0, 0), (0, n_pad - n)))
    x_r = x_t.reshape(_IN, rows_pad, _LANES)

    smem = pl.BlockSpec(memory_space=pltpu.MemorySpace.SMEM)

    out_r = pl.pallas_call(
        _mlp_kernel,
        out_shape=jax.ShapeDtypeStruct((rows_pad, _LANES), jnp.float32),
        grid_spec=pltpu.PrefetchScalarGridSpec(
            num_scalar_prefetch=0,
            grid=(rows_pad // tile_rows,),
            in_specs=[
                pl.BlockSpec((_IN, tile_rows, _LANES), lambda i: (0, i, 0)),  # streamed acts
                smem, smem, smem, smem, smem, smem,                           # resident weights
            ],
            out_specs=pl.BlockSpec((tile_rows, _LANES), lambda i: (i, 0)),
        ),
        compiler_params=pltpu.CompilerParams(
            # "parallel" shards the batch axis across v7x's 2 TCs; no-op on v5e/v6e.
            dimension_semantics=("parallel",),
        ),
        cost_estimate=pl.CostEstimate(
            flops=210 * n_pad, transcendentals=0, bytes_accessed=12 * n_pad),
    )(x_r, w1, b1, w2, b2, w3, b3)

    # Back to torch (batch, features) convention, dropping the pad (also fused in this jit).
    return out_r.reshape(n_pad)[:n][:, None]


def init_params(key):
    """Deterministic init mimicking nn.Linear's U(-1/sqrt(fan_in), 1/sqrt(fan_in))."""
    def linear_init(k, fan_in, fan_out):
        kw, kb = jax.random.split(k)
        bound = 1.0 / jnp.sqrt(jnp.float32(fan_in))
        # stored as (in, out) so forward computes x @ W + b
        w = jax.random.uniform(kw, (fan_in, fan_out), jnp.float32, -bound, bound)
        b = jax.random.uniform(kb, (fan_out,), jnp.float32, -bound, bound)
        return w, b

    k1, k2, k3 = jax.random.split(key, 3)
    w1, b1 = linear_init(k1, _IN, _H1)
    w2, b2 = linear_init(k2, _H1, _H2)
    w3, b3 = linear_init(k3, _H2, 1)
    return (w1, b1, w2, b2, w3, b3)


def _reference_forward(x, params):
    w1, b1, w2, b2, w3, b3 = params
    h1 = jnp.maximum(x @ w1 + b1, 0.0)
    h2 = jnp.maximum(h1 @ w2 + b2, 0.0)
    return h2 @ w3 + b3


if __name__ == "__main__":
    key = jax.random.PRNGKey(0)
    kx, kx2, kp = jax.random.split(key, 3)
    params = init_params(kp)

    # Small batch (exercises padding up to one (8, 128) chunk).
    batch = 8
    x = jax.random.normal(kx, (batch, 2), dtype=jnp.float32)
    out = jax.block_until_ready(circle_model_forward(x, params))
    ref = _reference_forward(x, params)
    assert out.shape == (batch, 1), out.shape
    assert jnp.allclose(out, ref, atol=1e-5, rtol=1e-5), "mismatch vs reference (batch=8)"

    # A non-multiple-of-128 batch to double-check the pad/slice path.
    batch2 = 300
    x2 = jax.random.normal(kx2, (batch2, 2), dtype=jnp.float32)
    out2 = jax.block_until_ready(circle_model_forward(x2, params))
    ref2 = _reference_forward(x2, params)
    assert out2.shape == (batch2, 1), out2.shape
    assert jnp.allclose(out2, ref2, atol=1e-5, rtol=1e-5), "mismatch vs reference (batch=300)"

    print("KERNEL_OK")
</pallas_src>

<mosaic_0001>
module attributes {stable_mosaic.version = 11 : i64} {
  func.func @_mlp_kernel(%arg0: i32, %arg1: memref<2x8x128xf32, #tpu.memory_space<vmem>>, %arg2: memref<2x8xf32, #tpu.memory_space<smem>>, %arg3: memref<8xf32, #tpu.memory_space<smem>>, %arg4: memref<8x8xf32, #tpu.memory_space<smem>>, %arg5: memref<8xf32, #tpu.memory_space<smem>>, %arg6: memref<8x1xf32, #tpu.memory_space<smem>>, %arg7: memref<1xf32, #tpu.memory_space<smem>>, %arg8: memref<8x128xf32, #tpu.memory_space<vmem>>) attributes {dimension_semantics = [#tpu.dimension_semantics<parallel>], iteration_bounds = array<i64: 1>, scalar_prefetch = 0 : i64, scratch_operands = 0 : i64, tpu.core_type = #tpu.core_type<tc>, window_params = [{transform_indices = @transform_0, window_bounds = array<i64: 2, 8, 128>}, {transform_indices = @transform_1, window_bounds = array<i64: 2, 8>}, {transform_indices = @transform_2, window_bounds = array<i64: 8>}, {transform_indices = @transform_3, window_bounds = array<i64: 8, 8>}, {transform_indices = @transform_4, window_bounds = array<i64: 8>}, {transform_indices = @transform_5, window_bounds = array<i64: 8, 1>}, {transform_indices = @transform_6, window_bounds = array<i64: 1>}, {transform_indices = @transform_7, window_bounds = array<i64: 8, 128>}]} {
    %c0 = arith.constant 0 : index
    %c0_0 = arith.constant 0 : index
    %0 = memref.load %arg2[%c0, %c0_0] : memref<2x8xf32, #tpu.memory_space<smem>>
    %c0_1 = arith.constant 0 : index
    %c1 = arith.constant 1 : index
    %1 = memref.load %arg2[%c0_1, %c1] : memref<2x8xf32, #tpu.memory_space<smem>>
    %c0_2 = arith.constant 0 : index
    %c2 = arith.constant 2 : index
    %2 = memref.load %arg2[%c0_2, %c2] : memref<2x8xf32, #tpu.memory_space<smem>>
    %c0_3 = arith.constant 0 : index
    %c3 = arith.constant 3 : index
    %3 = memref.load %arg2[%c0_3, %c3] : memref<2x8xf32, #tpu.memory_space<smem>>
    %c0_4 = arith.constant 0 : index
    %c4 = arith.constant 4 : index
    %4 = memref.load %arg2[%c0_4, %c4] : memref<2x8xf32, #tpu.memory_space<smem>>
    %c0_5 = arith.constant 0 : index
    %c5 = arith.constant 5 : index
    %5 = memref.load %arg2[%c0_5, %c5] : memref<2x8xf32, #tpu.memory_space<smem>>
    %c0_6 = arith.constant 0 : index
    %c6 = arith.constant 6 : index
    %6 = memref.load %arg2[%c0_6, %c6] : memref<2x8xf32, #tpu.memory_space<smem>>
    %c0_7 = arith.constant 0 : index
    %c7 = arith.constant 7 : index
    %7 = memref.load %arg2[%c0_7, %c7] : memref<2x8xf32, #tpu.memory_space<smem>>
    %c1_8 = arith.constant 1 : index
    %c0_9 = arith.constant 0 : index
    %8 = memref.load %arg2[%c1_8, %c0_9] : memref<2x8xf32, #tpu.memory_space<smem>>
    %c1_10 = arith.constant 1 : index
    %c1_11 = arith.constant 1 : index
    %9 = memref.load %arg2[%c1_10, %c1_11] : memref<2x8xf32, #tpu.memory_space<smem>>
    %c1_12 = arith.constant 1 : index
    %c2_13 = arith.constant 2 : index
    %10 = memref.load %arg2[%c1_12, %c2_13] : memref<2x8xf32, #tpu.memory_space<smem>>
    %c1_14 = arith.constant 1 : index
    %c3_15 = arith.constant 3 : index
    %11 = memref.load %arg2[%c1_14, %c3_15] : memref<2x8xf32, #tpu.memory_space<smem>>
    %c1_16 = arith.constant 1 : index
    %c4_17 = arith.constant 4 : index
    %12 = memref.load %arg2[%c1_16, %c4_17] : memref<2x8xf32, #tpu.memory_space<smem>>
    %c1_18 = arith.constant 1 : index
    %c5_19 = arith.constant 5 : index
    %13 = memref.load %arg2[%c1_18, %c5_19] : memref<2x8xf32, #tpu.memory_space<smem>>
    %c1_20 = arith.constant 1 : index
    %c6_21 = arith.constant 6 : index
    %14 = memref.load %arg2[%c1_20, %c6_21] : memref<2x8xf32, #tpu.memory_space<smem>>
    %c1_22 = arith.constant 1 : index
    %c7_23 = arith.constant 7 : index
    %15 = memref.load %arg2[%c1_22, %c7_23] : memref<2x8xf32, #tpu.memory_space<smem>>
    %c0_24 = arith.constant 0 : index
    %16 = memref.load %arg3[%c0_24] : memref<8xf32, #tpu.memory_space<smem>>
    %c1_25 = arith.constant 1 : index
    %17 = memref.load %arg3[%c1_25] : memref<8xf32, #tpu.memory_space<smem>>
    %c2_26 = arith.constant 2 : index
    %18 = memref.load %arg3[%c2_26] : memref<8xf32, #tpu.memory_space<smem>>
    %c3_27 = arith.constant 3 : index
    %19 = memref.load %arg3[%c3_27] : memref<8xf32, #tpu.memory_space<smem>>
    %c4_28 = arith.constant 4 : index
    %20 = memref.load %arg3[%c4_28] : memref<8xf32, #tpu.memory_space<smem>>
    %c5_29 = arith.constant 5 : index
    %21 = memref.load %arg3[%c5_29] : memref<8xf32, #tpu.memory_space<smem>>
    %c6_30 = arith.constant 6 : index
    %22 = memref.load %arg3[%c6_30] : memref<8xf32, #tpu.memory_space<smem>>
    %c7_31 = arith.constant 7 : index
    %23 = memref.load %arg3[%c7_31] : memref<8xf32, #tpu.memory_space<smem>>
    %c0_32 = arith.constant 0 : index
    %c0_33 = arith.constant 0 : index
    %24 = memref.load %arg4[%c0_32, %c0_33] : memref<8x8xf32, #tpu.memory_space<smem>>
    %c0_34 = arith.constant 0 : index
    %c1_35 = arith.constant 1 : index
    %25 = memref.load %arg4[%c0_34, %c1_35] : memref<8x8xf32, #tpu.memory_space<smem>>
    %c0_36 = arith.constant 0 : index
    %c2_37 = arith.constant 2 : index
    %26 = memref.load %arg4[%c0_36, %c2_37] : memref<8x8xf32, #tpu.memory_space<smem>>
    %c0_38 = arith.constant 0 : index
    %c3_39 = arith.constant 3 : index
    %27 = memref.load %arg4[%c0_38, %c3_39] : memref<8x8xf32, #tpu.memory_space<smem>>
    %c0_40 = arith.constant 0 : index
    %c4_41 = arith.constant 4 : index
    %28 = memref.load %arg4[%c0_40, %c4_41] : memref<8x8xf32, #tpu.memory_space<smem>>
    %c0_42 = arith.constant 0 : index
    %c5_43 = arith.constant 5 : index
    %29 = memref.load %arg4[%c0_42, %c5_43] : memref<8x8xf32, #tpu.memory_space<smem>>
    %c0_44 = arith.constant 0 : index
    %c6_45 = arith.constant 6 : index
    %30 = memref.load %arg4[%c0_44, %c6_45] : memref<8x8xf32, #tpu.memory_space<smem>>
    %c0_46 = arith.constant 0 : index
    %c7_47 = arith.constant 7 : index
    %31 = memref.load %arg4[%c0_46, %c7_47] : memref<8x8xf32, #tpu.memory_space<smem>>
    %c1_48 = arith.constant 1 : index
    %c0_49 = arith.constant 0 : index
    %32 = memref.load %arg4[%c1_48, %c0_49] : memref<8x8xf32, #tpu.memory_space<smem>>
    %c1_50 = arith.constant 1 : index
    %c1_51 = arith.constant 1 : index
    %33 = memref.load %arg4[%c1_50, %c1_51] : memref<8x8xf32, #tpu.memory_space<smem>>
    %c1_52 = arith.constant 1 : index
    %c2_53 = arith.constant 2 : index
    %34 = memref.load %arg4[%c1_52, %c2_53] : memref<8x8xf32, #tpu.memory_space<smem>>
    %c1_54 = arith.constant 1 : index
    %c3_55 = arith.constant 3 : index
    %35 = memref.load %arg4[%c1_54, %c3_55] : memref<8x8xf32, #tpu.memory_space<smem>>
    %c1_56 = arith.constant 1 : index
    %c4_57 = arith.constant 4 : index
    %36 = memref.load %arg4[%c1_56, %c4_57] : memref<8x8xf32, #tpu.memory_space<smem>>
    %c1_58 = arith.constant 1 : index
    %c5_59 = arith.constant 5 : index
    %37 = memref.load %arg4[%c1_58, %c5_59] : memref<8x8xf32, #tpu.memory_space<smem>>
    %c1_60 = arith.constant 1 : index
    %c6_61 = arith.constant 6 : index
    %38 = memref.load %arg4[%c1_60, %c6_61] : memref<8x8xf32, #tpu.memory_space<smem>>
    %c1_62 = arith.constant 1 : index
    %c7_63 = arith.constant 7 : index
    %39 = memref.load %arg4[%c1_62, %c7_63] : memref<8x8xf32, #tpu.memory_space<smem>>
    %c2_64 = arith.constant 2 : index
    %c0_65 = arith.constant 0 : index
    %40 = memref.load %arg4[%c2_64, %c0_65] : memref<8x8xf32, #tpu.memory_space<smem>>
    %c2_66 = arith.constant 2 : index
    %c1_67 = arith.constant 1 : index
    %41 = memref.load %arg4[%c2_66, %c1_67] : memref<8x8xf32, #tpu.memory_space<smem>>
    %c2_68 = arith.constant 2 : index
    %c2_69 = arith.constant 2 : index
    %42 = memref.load %arg4[%c2_68, %c2_69] : memref<8x8xf32, #tpu.memory_space<smem>>
    %c2_70 = arith.constant 2 : index
    %c3_71 = arith.constant 3 : index
    %43 = memref.load %arg4[%c2_70, %c3_71] : memref<8x8xf32, #tpu.memory_space<smem>>
    %c2_72 = arith.constant 2 : index
    %c4_73 = arith.constant 4 : index
    %44 = memref.load %arg4[%c2_72, %c4_73] : memref<8x8xf32, #tpu.memory_space<smem>>
    %c2_74 = arith.constant 2 : index
    %c5_75 = arith.constant 5 : index
    %45 = memref.load %arg4[%c2_74, %c5_75] : memref<8x8xf32, #tpu.memory_space<smem>>
    %c2_76 = arith.constant 2 : index
    %c6_77 = arith.constant 6 : index
    %46 = memref.load %arg4[%c2_76, %c6_77] : memref<8x8xf32, #tpu.memory_space<smem>>
    %c2_78 = arith.constant 2 : index
    %c7_79 = arith.constant 7 : index
    %47 = memref.load %arg4[%c2_78, %c7_79] : memref<8x8xf32, #tpu.memory_space<smem>>
    %c3_80 = arith.constant 3 : index
    %c0_81 = arith.constant 0 : index
    %48 = memref.load %arg4[%c3_80, %c0_81] : memref<8x8xf32, #tpu.memory_space<smem>>
    %c3_82 = arith.constant 3 : index
    %c1_83 = arith.constant 1 : index
    %49 = memref.load %arg4[%c3_82, %c1_83] : memref<8x8xf32, #tpu.memory_space<smem>>
    %c3_84 = arith.constant 3 : index
    %c2_85 = arith.constant 2 : index
    %50 = memref.load %arg4[%c3_84, %c2_85] : memref<8x8xf32, #tpu.memory_space<smem>>
    %c3_86 = arith.constant 3 : index
    %c3_87 = arith.constant 3 : index
    %51 = memref.load %arg4[%c3_86, %c3_87] : memref<8x8xf32, #tpu.memory_space<smem>>
    %c3_88 = arith.constant 3 : index
    %c4_89 = arith.constant 4 : index
    %52 = memref.load %arg4[%c3_88, %c4_89] : memref<8x8xf32, #tpu.memory_space<smem>>
    %c3_90 = arith.constant 3 : index
    %c5_91 = arith.constant 5 : index
    %53 = memref.load %arg4[%c3_90, %c5_91] : memref<8x8xf32, #tpu.memory_space<smem>>
    %c3_92 = arith.constant 3 : index
    %c6_93 = arith.constant 6 : index
    %54 = memref.load %arg4[%c3_92, %c6_93] : memref<8x8xf32, #tpu.memory_space<smem>>
    %c3_94 = arith.constant 3 : index
    %c7_95 = arith.constant 7 : index
    %55 = memref.load %arg4[%c3_94, %c7_95] : memref<8x8xf32, #tpu.memory_space<smem>>
    %c4_96 = arith.constant 4 : index
    %c0_97 = arith.constant 0 : index
    %56 = memref.load %arg4[%c4_96, %c0_97] : memref<8x8xf32, #tpu.memory_space<smem>>
    %c4_98 = arith.constant 4 : index
    %c1_99 = arith.constant 1 : index
    %57 = memref.load %arg4[%c4_98, %c1_99] : memref<8x8xf32, #tpu.memory_space<smem>>
    %c4_100 = arith.constant 4 : index
    %c2_101 = arith.constant 2 : index
    %58 = memref.load %arg4[%c4_100, %c2_101] : memref<8x8xf32, #tpu.memory_space<smem>>
    %c4_102 = arith.constant 4 : index
    %c3_103 = arith.constant 3 : index
    %59 = memref.load %arg4[%c4_102, %c3_103] : memref<8x8xf32, #tpu.memory_space<smem>>
    %c4_104 = arith.constant 4 : index
    %c4_105 = arith.constant 4 : index
    %60 = memref.load %arg4[%c4_104, %c4_105] : memref<8x8xf32, #tpu.memory_space<smem>>
    %c4_106 = arith.constant 4 : index
    %c5_107 = arith.constant 5 : index
    %61 = memref.load %arg4[%c4_106, %c5_107] : memref<8x8xf32, #tpu.memory_space<smem>>
    %c4_108 = arith.constant 4 : index
    %c6_109 = arith.constant 6 : index
    %62 = memref.load %arg4[%c4_108, %c6_109] : memref<8x8xf32, #tpu.memory_space<smem>>
    %c4_110 = arith.constant 4 : index
    %c7_111 = arith.constant 7 : index
    %63 = memref.load %arg4[%c4_110, %c7_111] : memref<8x8xf32, #tpu.memory_space<smem>>
    %c5_112 = arith.constant 5 : index
    %c0_113 = arith.constant 0 : index
    %64 = memref.load %arg4[%c5_112, %c0_113] : memref<8x8xf32, #tpu.memory_space<smem>>
    %c5_114 = arith.constant 5 : index
    %c1_115 = arith.constant 1 : index
    %65 = memref.load %arg4[%c5_114, %c1_115] : memref<8x8xf32, #tpu.memory_space<smem>>
    %c5_116 = arith.constant 5 : index
    %c2_117 = arith.constant 2 : index
    %66 = memref.load %arg4[%c5_116, %c2_117] : memref<8x8xf32, #tpu.memory_space<smem>>
    %c5_118 = arith.constant 5 : index
    %c3_119 = arith.constant 3 : index
    %67 = memref.load %arg4[%c5_118, %c3_119] : memref<8x8xf32, #tpu.memory_space<smem>>
    %c5_120 = arith.constant 5 : index
    %c4_121 = arith.constant 4 : index
    %68 = memref.load %arg4[%c5_120, %c4_121] : memref<8x8xf32, #tpu.memory_space<smem>>
    %c5_122 = arith.constant 5 : index
    %c5_123 = arith.constant 5 : index
    %69 = memref.load %arg4[%c5_122, %c5_123] : memref<8x8xf32, #tpu.memory_space<smem>>
    %c5_124 = arith.constant 5 : index
    %c6_125 = arith.constant 6 : index
    %70 = memref.load %arg4[%c5_124, %c6_125] : memref<8x8xf32, #tpu.memory_space<smem>>
    %c5_126 = arith.constant 5 : index
    %c7_127 = arith.constant 7 : index
    %71 = memref.load %arg4[%c5_126, %c7_127] : memref<8x8xf32, #tpu.memory_space<smem>>
    %c6_128 = arith.constant 6 : index
    %c0_129 = arith.constant 0 : index
    %72 = memref.load %arg4[%c6_128, %c0_129] : memref<8x8xf32, #tpu.memory_space<smem>>
    %c6_130 = arith.constant 6 : index
    %c1_131 = arith.constant 1 : index
    %73 = memref.load %arg4[%c6_130, %c1_131] : memref<8x8xf32, #tpu.memory_space<smem>>
    %c6_132 = arith.constant 6 : index
    %c2_133 = arith.constant 2 : index
    %74 = memref.load %arg4[%c6_132, %c2_133] : memref<8x8xf32, #tpu.memory_space<smem>>
    %c6_134 = arith.constant 6 : index
    %c3_135 = arith.constant 3 : index
    %75 = memref.load %arg4[%c6_134, %c3_135] : memref<8x8xf32, #tpu.memory_space<smem>>
    %c6_136 = arith.constant 6 : index
    %c4_137 = arith.constant 4 : index
    %76 = memref.load %arg4[%c6_136, %c4_137] : memref<8x8xf32, #tpu.memory_space<smem>>
    %c6_138 = arith.constant 6 : index
    %c5_139 = arith.constant 5 : index
    %77 = memref.load %arg4[%c6_138, %c5_139] : memref<8x8xf32, #tpu.memory_space<smem>>
    %c6_140 = arith.constant 6 : index
    %c6_141 = arith.constant 6 : index
    %78 = memref.load %arg4[%c6_140, %c6_141] : memref<8x8xf32, #tpu.memory_space<smem>>
    %c6_142 = arith.constant 6 : index
    %c7_143 = arith.constant 7 : index
    %79 = memref.load %arg4[%c6_142, %c7_143] : memref<8x8xf32, #tpu.memory_space<smem>>
    %c7_144 = arith.constant 7 : index
    %c0_145 = arith.constant 0 : index
    %80 = memref.load %arg4[%c7_144, %c0_145] : memref<8x8xf32, #tpu.memory_space<smem>>
    %c7_146 = arith.constant 7 : index
    %c1_147 = arith.constant 1 : index
    %81 = memref.load %arg4[%c7_146, %c1_147] : memref<8x8xf32, #tpu.memory_space<smem>>
    %c7_148 = arith.constant 7 : index
    %c2_149 = arith.constant 2 : index
    %82 = memref.load %arg4[%c7_148, %c2_149] : memref<8x8xf32, #tpu.memory_space<smem>>
    %c7_150 = arith.constant 7 : index
    %c3_151 = arith.constant 3 : index
    %83 = memref.load %arg4[%c7_150, %c3_151] : memref<8x8xf32, #tpu.memory_space<smem>>
    %c7_152 = arith.constant 7 : index
    %c4_153 = arith.constant 4 : index
    %84 = memref.load %arg4[%c7_152, %c4_153] : memref<8x8xf32, #tpu.memory_space<smem>>
    %c7_154 = arith.constant 7 : index
    %c5_155 = arith.constant 5 : index
    %85 = memref.load %arg4[%c7_154, %c5_155] : memref<8x8xf32, #tpu.memory_space<smem>>
    %c7_156 = arith.constant 7 : index
    %c6_157 = arith.constant 6 : index
    %86 = memref.load %arg4[%c7_156, %c6_157] : memref<8x8xf32, #tpu.memory_space<smem>>
    %c7_158 = arith.constant 7 : index
    %c7_159 = arith.constant 7 : index
    %87 = memref.load %arg4[%c7_158, %c7_159] : memref<8x8xf32, #tpu.memory_space<smem>>
    %c0_160 = arith.constant 0 : index
    %88 = memref.load %arg5[%c0_160] : memref<8xf32, #tpu.memory_space<smem>>
    %c1_161 = arith.constant 1 : index
    %89 = memref.load %arg5[%c1_161] : memref<8xf32, #tpu.memory_space<smem>>
    %c2_162 = arith.constant 2 : index
    %90 = memref.load %arg5[%c2_162] : memref<8xf32, #tpu.memory_space<smem>>
    %c3_163 = arith.constant 3 : index
    %91 = memref.load %arg5[%c3_163] : memref<8xf32, #tpu.memory_space<smem>>
    %c4_164 = arith.constant 4 : index
    %92 = memref.load %arg5[%c4_164] : memref<8xf32, #tpu.memory_space<smem>>
    %c5_165 = arith.constant 5 : index
    %93 = memref.load %arg5[%c5_165] : memref<8xf32, #tpu.memory_space<smem>>
    %c6_166 = arith.constant 6 : index
    %94 = memref.load %arg5[%c6_166] : memref<8xf32, #tpu.memory_space<smem>>
    %c7_167 = arith.constant 7 : index
    %95 = memref.load %arg5[%c7_167] : memref<8xf32, #tpu.memory_space<smem>>
    %c0_168 = arith.constant 0 : index
    %c0_169 = arith.constant 0 : index
    %96 = memref.load %arg6[%c0_168, %c0_169] : memref<8x1xf32, #tpu.memory_space<smem>>
    %c1_170 = arith.constant 1 : index
    %c0_171 = arith.constant 0 : index
    %97 = memref.load %arg6[%c1_170, %c0_171] : memref<8x1xf32, #tpu.memory_space<smem>>
    %c2_172 = arith.constant 2 : index
    %c0_173 = arith.constant 0 : index
    %98 = memref.load %arg6[%c2_172, %c0_173] : memref<8x1xf32, #tpu.memory_space<smem>>
    %c3_174 = arith.constant 3 : index
    %c0_175 = arith.constant 0 : index
    %99 = memref.load %arg6[%c3_174, %c0_175] : memref<8x1xf32, #tpu.memory_space<smem>>
    %c4_176 = arith.constant 4 : index
    %c0_177 = arith.constant 0 : index
    %100 = memref.load %arg6[%c4_176, %c0_177] : memref<8x1xf32, #tpu.memory_space<smem>>
    %c5_178 = arith.constant 5 : index
    %c0_179 = arith.constant 0 : index
    %101 = memref.load %arg6[%c5_178, %c0_179] : memref<8x1xf32, #tpu.memory_space<smem>>
    %c6_180 = arith.constant 6 : index
    %c0_181 = arith.constant 0 : index
    %102 = memref.load %arg6[%c6_180, %c0_181] : memref<8x1xf32, #tpu.memory_space<smem>>
    %c7_182 = arith.constant 7 : index
    %c0_183 = arith.constant 0 : index
    %103 = memref.load %arg6[%c7_182, %c0_183] : memref<8x1xf32, #tpu.memory_space<smem>>
    %c0_184 = arith.constant 0 : index
    %104 = memref.load %arg7[%c0_184] : memref<1xf32, #tpu.memory_space<smem>>
    %c0_i32 = arith.constant 0 : i32
    %c8_i32 = arith.constant 8 : i32
    %105 = arith.muli %c0_i32, %c8_i32 : i32
    %106 = tpu.assume_multiple %105, 8 : i32
    %c0_185 = arith.constant 0 : index
    %107 = arith.index_cast %106 : i32 to index
    %c0_186 = arith.constant 0 : index
    %108 = vector.load %arg1[%c0_185, %107, %c0_186] : memref<2x8x128xf32, #tpu.memory_space<vmem>>, vector<2x8x128xf32>
    %109 = vector.extract_strided_slice %108 {offsets = [0, 0, 0], sizes = [1, 8, 128], strides = [1, 1, 1]} : vector<2x8x128xf32> to vector<1x8x128xf32>
    %110 = vector.shape_cast %109 : vector<1x8x128xf32> to vector<8x128xf32>
    %111 = vector.extract_strided_slice %108 {offsets = [1, 0, 0], sizes = [1, 8, 128], strides = [1, 1, 1]} : vector<2x8x128xf32> to vector<1x8x128xf32>
    %112 = vector.shape_cast %111 : vector<1x8x128xf32> to vector<8x128xf32>
    %113 = vector.broadcast %0 : f32 to vector<8x128xf32>
    %114 = arith.mulf %113, %110 : vector<8x128xf32>
    %115 = vector.broadcast %8 : f32 to vector<8x128xf32>
    %116 = arith.mulf %115, %112 : vector<8x128xf32>
    %117 = arith.addf %114, %116 : vector<8x128xf32>
    %118 = vector.broadcast %16 : f32 to vector<8x128xf32>
    %119 = arith.addf %117, %118 : vector<8x128xf32>
    %cst = arith.constant 0.000000e+00 : f32
    %120 = vector.broadcast %cst : f32 to vector<8x128xf32>
    %121 = arith.maximumf %119, %120 : vector<8x128xf32>
    %122 = vector.broadcast %1 : f32 to vector<8x128xf32>
    %123 = arith.mulf %122, %110 : vector<8x128xf32>
    %124 = vector.broadcast %9 : f32 to vector<8x128xf32>
    %125 = arith.mulf %124, %112 : vector<8x128xf32>
    %126 = arith.addf %123, %125 : vector<8x128xf32>
    %127 = vector.broadcast %17 : f32 to vector<8x128xf32>
    %128 = arith.addf %126, %127 : vector<8x128xf32>
    %cst_187 = arith.constant 0.000000e+00 : f32
    %129 = vector.broadcast %cst_187 : f32 to vector<8x128xf32>
    %130 = arith.maximumf %128, %129 : vector<8x128xf32>
    %131 = vector.broadcast %2 : f32 to vector<8x128xf32>
    %132 = arith.mulf %131, %110 : vector<8x128xf32>
    %133 = vector.broadcast %10 : f32 to vector<8x128xf32>
    %134 = arith.mulf %133, %112 : vector<8x128xf32>
    %135 = arith.addf %132, %134 : vector<8x128xf32>
    %136 = vector.broadcast %18 : f32 to vector<8x128xf32>
    %137 = arith.addf %135, %136 : vector<8x128xf32>
    %cst_188 = arith.constant 0.000000e+00 : f32
    %138 = vector.broadcast %cst_188 : f32 to vector<8x128xf32>
    %139 = arith.maximumf %137, %138 : vector<8x128xf32>
    %140 = vector.broadcast %3 : f32 to vector<8x128xf32>
    %141 = arith.mulf %140, %110 : vector<8x128xf32>
    %142 = vector.broadcast %11 : f32 to vector<8x128xf32>
    %143 = arith.mulf %142, %112 : vector<8x128xf32>
    %144 = arith.addf %141, %143 : vector<8x128xf32>
    %145 = vector.broadcast %19 : f32 to vector<8x128xf32>
    %146 = arith.addf %144, %145 : vector<8x128xf32>
    %cst_189 = arith.constant 0.000000e+00 : f32
    %147 = vector.broadcast %cst_189 : f32 to vector<8x128xf32>
    %148 = arith.maximumf %146, %147 : vector<8x128xf32>
    %149 = vector.broadcast %4 : f32 to vector<8x128xf32>
    %150 = arith.mulf %149, %110 : vector<8x128xf32>
    %151 = vector.broadcast %12 : f32 to vector<8x128xf32>
    %152 = arith.mulf %151, %112 : vector<8x128xf32>
    %153 = arith.addf %150, %152 : vector<8x128xf32>
    %154 = vector.broadcast %20 : f32 to vector<8x128xf32>
    %155 = arith.addf %153, %154 : vector<8x128xf32>
    %cst_190 = arith.constant 0.000000e+00 : f32
    %156 = vector.broadcast %cst_190 : f32 to vector<8x128xf32>
    %157 = arith.maximumf %155, %156 : vector<8x128xf32>
    %158 = vector.broadcast %5 : f32 to vector<8x128xf32>
    %159 = arith.mulf %158, %110 : vector<8x128xf32>
    %160 = vector.broadcast %13 : f32 to vector<8x128xf32>
    %161 = arith.mulf %160, %112 : vector<8x128xf32>
    %162 = arith.addf %159, %161 : vector<8x128xf32>
    %163 = vector.broadcast %21 : f32 to vector<8x128xf32>
    %164 = arith.addf %162, %163 : vector<8x128xf32>
    %cst_191 = arith.constant 0.000000e+00 : f32
    %165 = vector.broadcast %cst_191 : f32 to vector<8x128xf32>
    %166 = arith.maximumf %164, %165 : vector<8x128xf32>
    %167 = vector.broadcast %6 : f32 to vector<8x128xf32>
    %168 = arith.mulf %167, %110 : vector<8x128xf32>
    %169 = vector.broadcast %14 : f32 to vector<8x128xf32>
    %170 = arith.mulf %169, %112 : vector<8x128xf32>
    %171 = arith.addf %168, %170 : vector<8x128xf32>
    %172 = vector.broadcast %22 : f32 to vector<8x128xf32>
    %173 = arith.addf %171, %172 : vector<8x128xf32>
    %cst_192 = arith.constant 0.000000e+00 : f32
    %174 = vector.broadcast %cst_192 : f32 to vector<8x128xf32>
    %175 = arith.maximumf %173, %174 : vector<8x128xf32>
    %176 = vector.broadcast %7 : f32 to vector<8x128xf32>
    %177 = arith.mulf %176, %110 : vector<8x128xf32>
    %178 = vector.broadcast %15 : f32 to vector<8x128xf32>
    %179 = arith.mulf %178, %112 : vector<8x128xf32>
    %180 = arith.addf %177, %179 : vector<8x128xf32>
    %181 = vector.broadcast %23 : f32 to vector<8x128xf32>
    %182 = arith.addf %180, %181 : vector<8x128xf32>
    %cst_193 = arith.constant 0.000000e+00 : f32
    %183 = vector.broadcast %cst_193 : f32 to vector<8x128xf32>
    %184 = arith.maximumf %182, %183 : vector<8x128xf32>
    %185 = vector.broadcast %24 : f32 to vector<8x128xf32>
    %186 = arith.mulf %121, %185 : vector<8x128xf32>
    %187 = vector.broadcast %32 : f32 to vector<8x128xf32>
    %188 = arith.mulf %130, %187 : vector<8x128xf32>
    %189 = arith.addf %186, %188 : vector<8x128xf32>
    %190 = vector.broadcast %40 : f32 to vector<8x128xf32>
    %191 = arith.mulf %139, %190 : vector<8x128xf32>
    %192 = arith.addf %189, %191 : vector<8x128xf32>
    %193 = vector.broadcast %48 : f32 to vector<8x128xf32>
    %194 = arith.mulf %148, %193 : vector<8x128xf32>
    %195 = arith.addf %192, %194 : vector<8x128xf32>
    %196 = vector.broadcast %56 : f32 to vector<8x128xf32>
    %197 = arith.mulf %157, %196 : vector<8x128xf32>
    %198 = arith.addf %195, %197 : vector<8x128xf32>
    %199 = vector.broadcast %64 : f32 to vector<8x128xf32>
    %200 = arith.mulf %166, %199 : vector<8x128xf32>
    %201 = arith.addf %198, %200 : vector<8x128xf32>
    %202 = vector.broadcast %72 : f32 to vector<8x128xf32>
    %203 = arith.mulf %175, %202 : vector<8x128xf32>
    %204 = arith.addf %201, %203 : vector<8x128xf32>
    %205 = vector.broadcast %80 : f32 to vector<8x128xf32>
    %206 = arith.mulf %184, %205 : vector<8x128xf32>
    %207 = arith.addf %204, %206 : vector<8x128xf32>
    %208 = vector.broadcast %88 : f32 to vector<8x128xf32>
    %209 = arith.addf %207, %208 : vector<8x128xf32>
    %cst_194 = arith.constant 0.000000e+00 : f32
    %210 = vector.broadcast %cst_194 : f32 to vector<8x128xf32>
    %211 = arith.maximumf %209, %210 : vector<8x128xf32>
    %212 = vector.broadcast %25 : f32 to vector<8x128xf32>
    %213 = arith.mulf %121, %212 : vector<8x128xf32>
    %214 = vector.broadcast %33 : f32 to vector<8x128xf32>
    %215 = arith.mulf %130, %214 : vector<8x128xf32>
    %216 = arith.addf %213, %215 : vector<8x128xf32>
    %217 = vector.broadcast %41 : f32 to vector<8x128xf32>
    %218 = arith.mulf %139, %217 : vector<8x128xf32>
    %219 = arith.addf %216, %218 : vector<8x128xf32>
    %220 = vector.broadcast %49 : f32 to vector<8x128xf32>
    %221 = arith.mulf %148, %220 : vector<8x128xf32>
    %222 = arith.addf %219, %221 : vector<8x128xf32>
    %223 = vector.broadcast %57 : f32 to vector<8x128xf32>
    %224 = arith.mulf %157, %223 : vector<8x128xf32>
    %225 = arith.addf %222, %224 : vector<8x128xf32>
    %226 = vector.broadcast %65 : f32 to vector<8x128xf32>
    %227 = arith.mulf %166, %226 : vector<8x128xf32>
    %228 = arith.addf %225, %227 : vector<8x128xf32>
    %229 = vector.broadcast %73 : f32 to vector<8x128xf32>
    %230 = arith.mulf %175, %229 : vector<8x128xf32>
    %231 = arith.addf %228, %230 : vector<8x128xf32>
    %232 = vector.broadcast %81 : f32 to vector<8x128xf32>
    %233 = arith.mulf %184, %232 : vector<8x128xf32>
    %234 = arith.addf %231, %233 : vector<8x128xf32>
    %235 = vector.broadcast %89 : f32 to vector<8x128xf32>
    %236 = arith.addf %234, %235 : vector<8x128xf32>
    %cst_195 = arith.constant 0.000000e+00 : f32
    %237 = vector.broadcast %cst_195 : f32 to vector<8x128xf32>
    %238 = arith.maximumf %236, %237 : vector<8x128xf32>
    %239 = vector.broadcast %26 : f32 to vector<8x128xf32>
    %240 = arith.mulf %121, %239 : vector<8x128xf32>
    %241 = vector.broadcast %34 : f32 to vector<8x128xf32>
    %242 = arith.mulf %130, %241 : vector<8x128xf32>
    %243 = arith.addf %240, %242 : vector<8x128xf32>
    %244 = vector.broadcast %42 : f32 to vector<8x128xf32>
    %245 = arith.mulf %139, %244 : vector<8x128xf32>
    %246 = arith.addf %243, %245 : vector<8x128xf32>
    %247 = vector.broadcast %50 : f32 to vector<8x128xf32>
    %248 = arith.mulf %148, %247 : vector<8x128xf32>
    %249 = arith.addf %246, %248 : vector<8x128xf32>
    %250 = vector.broadcast %58 : f32 to vector<8x128xf32>
    %251 = arith.mulf %157, %250 : vector<8x128xf32>
    %252 = arith.addf %249, %251 : vector<8x128xf32>
    %253 = vector.broadcast %66 : f32 to vector<8x128xf32>
    %254 = arith.mulf %166, %253 : vector<8x128xf32>
    %255 = arith.addf %252, %254 : vector<8x128xf32>
    %256 = vector.broadcast %74 : f32 to vector<8x128xf32>
    %257 = arith.mulf %175, %256 : vector<8x128xf32>
    %258 = arith.addf %255, %257 : vector<8x128xf32>
    %259 = vector.broadcast %82 : f32 to vector<8x128xf32>
    %260 = arith.mulf %184, %259 : vector<8x128xf32>
    %261 = arith.addf %258, %260 : vector<8x128xf32>
    %262 = vector.broadcast %90 : f32 to vector<8x128xf32>
    %263 = arith.addf %261, %262 : vector<8x128xf32>
    %cst_196 = arith.constant 0.000000e+00 : f32
    %264 = vector.broadcast %cst_196 : f32 to vector<8x128xf32>
    %265 = arith.maximumf %263, %264 : vector<8x128xf32>
    %266 = vector.broadcast %27 : f32 to vector<8x128xf32>
    %267 = arith.mulf %121, %266 : vector<8x128xf32>
    %268 = vector.broadcast %35 : f32 to vector<8x128xf32>
    %269 = arith.mulf %130, %268 : vector<8x128xf32>
    %270 = arith.addf %267, %269 : vector<8x128xf32>
    %271 = vector.broadcast %43 : f32 to vector<8x128xf32>
    %272 = arith.mulf %139, %271 : vector<8x128xf32>
    %273 = arith.addf %270, %272 : vector<8x128xf32>
    %274 = vector.broadcast %51 : f32 to vector<8x128xf32>
    %275 = arith.mulf %148, %274 : vector<8x128xf32>
    %276 = arith.addf %273, %275 : vector<8x128xf32>
    %277 = vector.broadcast %59 : f32 to vector<8x128xf32>
    %278 = arith.mulf %157, %277 : vector<8x128xf32>
    %279 = arith.addf %276, %278 : vector<8x128xf32>
    %280 = vector.broadcast %67 : f32 to vector<8x128xf32>
    %281 = arith.mulf %166, %280 : vector<8x128xf32>
    %282 = arith.addf %279, %281 : vector<8x128xf32>
    %283 = vector.broadcast %75 : f32 to vector<8x128xf32>
    %284 = arith.mulf %175, %283 : vector<8x128xf32>
    %285 = arith.addf %282, %284 : vector<8x128xf32>
    %286 = vector.broadcast %83 : f32 to vector<8x128xf32>
    %287 = arith.mulf %184, %286 : vector<8x128xf32>
    %288 = arith.addf %285, %287 : vector<8x128xf32>
    %289 = vector.broadcast %91 : f32 to vector<8x128xf32>
    %290 = arith.addf %288, %289 : vector<8x128xf32>
    %cst_197 = arith.constant 0.000000e+00 : f32
    %291 = vector.broadcast %cst_197 : f32 to vector<8x128xf32>
    %292 = arith.maximumf %290, %291 : vector<8x128xf32>
    %293 = vector.broadcast %28 : f32 to vector<8x128xf32>
    %294 = arith.mulf %121, %293 : vector<8x128xf32>
    %295 = vector.broadcast %36 : f32 to vector<8x128xf32>
    %296 = arith.mulf %130, %295 : vector<8x128xf32>
    %297 = arith.addf %294, %296 : vector<8x128xf32>
    %298 = vector.broadcast %44 : f32 to vector<8x128xf32>
    %299 = arith.mulf %139, %298 : vector<8x128xf32>
    %300 = arith.addf %297, %299 : vector<8x128xf32>
    %301 = vector.broadcast %52 : f32 to vector<8x128xf32>
    %302 = arith.mulf %148, %301 : vector<8x128xf32>
    %303 = arith.addf %300, %302 : vector<8x128xf32>
    %304 = vector.broadcast %60 : f32 to vector<8x128xf32>
    %305 = arith.mulf %157, %304 : vector<8x128xf32>
    %306 = arith.addf %303, %305 : vector<8x128xf32>
    %307 = vector.broadcast %68 : f32 to vector<8x128xf32>
    %308 = arith.mulf %166, %307 : vector<8x128xf32>
    %309 = arith.addf %306, %308 : vector<8x128xf32>
    %310 = vector.broadcast %76 : f32 to vector<8x128xf32>
    %311 = arith.mulf %175, %310 : vector<8x128xf32>
    %312 = arith.addf %309, %311 : vector<8x128xf32>
    %313 = vector.broadcast %84 : f32 to vector<8x128xf32>
    %314 = arith.mulf %184, %313 : vector<8x128xf32>
    %315 = arith.addf %312, %314 : vector<8x128xf32>
    %316 = vector.broadcast %92 : f32 to vector<8x128xf32>
    %317 = arith.addf %315, %316 : vector<8x128xf32>
    %cst_198 = arith.constant 0.000000e+00 : f32
    %318 = vector.broadcast %cst_198 : f32 to vector<8x128xf32>
    %319 = arith.maximumf %317, %318 : vector<8x128xf32>
    %320 = vector.broadcast %29 : f32 to vector<8x128xf32>
    %321 = arith.mulf %121, %320 : vector<8x128xf32>
    %322 = vector.broadcast %37 : f32 to vector<8x128xf32>
    %323 = arith.mulf %130, %322 : vector<8x128xf32>
    %324 = arith.addf %321, %323 : vector<8x128xf32>
    %325 = vector.broadcast %45 : f32 to vector<8x128xf32>
    %326 = arith.mulf %139, %325 : vector<8x128xf32>
    %327 = arith.addf %324, %326 : vector<8x128xf32>
    %328 = vector.broadcast %53 : f32 to vector<8x128xf32>
    %329 = arith.mulf %148, %328 : vector<8x128xf32>
    %330 = arith.addf %327, %329 : vector<8x128xf32>
    %331 = vector.broadcast %61 : f32 to vector<8x128xf32>
    %332 = arith.mulf %157, %331 : vector<8x128xf32>
    %333 = arith.addf %330, %332 : vector<8x128xf32>
    %334 = vector.broadcast %69 : f32 to vector<8x128xf32>
    %335 = arith.mulf %166, %334 : vector<8x128xf32>
    %336 = arith.addf %333, %335 : vector<8x128xf32>
    %337 = vector.broadcast %77 : f32 to vector<8x128xf32>
    %338 = arith.mulf %175, %337 : vector<8x128xf32>
    %339 = arith.addf %336, %338 : vector<8x128xf32>
    %340 = vector.broadcast %85 : f32 to vector<8x128xf32>
    %341 = arith.mulf %184, %340 : vector<8x128xf32>
    %342 = arith.addf %339, %341 : vector<8x128xf32>
    %343 = vector.broadcast %93 : f32 to vector<8x128xf32>
    %344 = arith.addf %342, %343 : vector<8x128xf32>
    %cst_199 = arith.constant 0.000000e+00 : f32
    %345 = vector.broadcast %cst_199 : f32 to vector<8x128xf32>
    %346 = arith.maximumf %344, %345 : vector<8x128xf32>
    %347 = vector.broadcast %30 : f32 to vector<8x128xf32>
    %348 = arith.mulf %121, %347 : vector<8x128xf32>
    %349 = vector.broadcast %38 : f32 to vector<8x128xf32>
    %350 = arith.mulf %130, %349 : vector<8x128xf32>
    %351 = arith.addf %348, %350 : vector<8x128xf32>
    %352 = vector.broadcast %46 : f32 to vector<8x128xf32>
    %353 = arith.mulf %139, %352 : vector<8x128xf32>
    %354 = arith.addf %351, %353 : vector<8x128xf32>
    %355 = vector.broadcast %54 : f32 to vector<8x128xf32>
    %356 = arith.mulf %148, %355 : vector<8x128xf32>
    %357 = arith.addf %354, %356 : vector<8x128xf32>
    %358 = vector.broadcast %62 : f32 to vector<8x128xf32>
    %359 = arith.mulf %157, %358 : vector<8x128xf32>
    %360 = arith.addf %357, %359 : vector<8x128xf32>
    %361 = vector.broadcast %70 : f32 to vector<8x128xf32>
    %362 = arith.mulf %166, %361 : vector<8x128xf32>
    %363 = arith.addf %360, %362 : vector<8x128xf32>
    %364 = vector.broadcast %78 : f32 to vector<8x128xf32>
    %365 = arith.mulf %175, %364 : vector<8x128xf32>
    %366 = arith.addf %363, %365 : vector<8x128xf32>
    %367 = vector.broadcast %86 : f32 to vector<8x128xf32>
    %368 = arith.mulf %184, %367 : vector<8x128xf32>
    %369 = arith.addf %366, %368 : vector<8x128xf32>
    %370 = vector.broadcast %94 : f32 to vector<8x128xf32>
    %371 = arith.addf %369, %370 : vector<8x128xf32>
    %cst_200 = arith.constant 0.000000e+00 : f32
    %372 = vector.broadcast %cst_200 : f32 to vector<8x128xf32>
    %373 = arith.maximumf %371, %372 : vector<8x128xf32>
    %374 = vector.broadcast %31 : f32 to vector<8x128xf32>
    %375 = arith.mulf %121, %374 : vector<8x128xf32>
    %376 = vector.broadcast %39 : f32 to vector<8x128xf32>
    %377 = arith.mulf %130, %376 : vector<8x128xf32>
    %378 = arith.addf %375, %377 : vector<8x128xf32>
    %379 = vector.broadcast %47 : f32 to vector<8x128xf32>
    %380 = arith.mulf %139, %379 : vector<8x128xf32>
    %381 = arith.addf %378, %380 : vector<8x128xf32>
    %382 = vector.broadcast %55 : f32 to vector<8x128xf32>
    %383 = arith.mulf %148, %382 : vector<8x128xf32>
    %384 = arith.addf %381, %383 : vector<8x128xf32>
    %385 = vector.broadcast %63 : f32 to vector<8x128xf32>
    %386 = arith.mulf %157, %385 : vector<8x128xf32>
    %387 = arith.addf %384, %386 : vector<8x128xf32>
    %388 = vector.broadcast %71 : f32 to vector<8x128xf32>
    %389 = arith.mulf %166, %388 : vector<8x128xf32>
    %390 = arith.addf %387, %389 : vector<8x128xf32>
    %391 = vector.broadcast %79 : f32 to vector<8x128xf32>
    %392 = arith.mulf %175, %391 : vector<8x128xf32>
    %393 = arith.addf %390, %392 : vector<8x128xf32>
    %394 = vector.broadcast %87 : f32 to vector<8x128xf32>
    %395 = arith.mulf %184, %394 : vector<8x128xf32>
    %396 = arith.addf %393, %395 : vector<8x128xf32>
    %397 = vector.broadcast %95 : f32 to vector<8x128xf32>
    %398 = arith.addf %396, %397 : vector<8x128xf32>
    %cst_201 = arith.constant 0.000000e+00 : f32
    %399 = vector.broadcast %cst_201 : f32 to vector<8x128xf32>
    %400 = arith.maximumf %398, %399 : vector<8x128xf32>
    %401 = vector.broadcast %96 : f32 to vector<8x128xf32>
    %402 = arith.mulf %211, %401 : vector<8x128xf32>
    %403 = vector.broadcast %97 : f32 to vector<8x128xf32>
    %404 = arith.mulf %238, %403 : vector<8x128xf32>
    %405 = arith.addf %402, %404 : vector<8x128xf32>
    %406 = vector.broadcast %98 : f32 to vector<8x128xf32>
    %407 = arith.mulf %265, %406 : vector<8x128xf32>
    %408 = arith.addf %405, %407 : vector<8x128xf32>
    %409 = vector.broadcast %99 : f32 to vector<8x128xf32>
    %410 = arith.mulf %292, %409 : vector<8x128xf32>
    %411 = arith.addf %408, %410 : vector<8x128xf32>
    %412 = vector.broadcast %100 : f32 to vector<8x128xf32>
    %413 = arith.mulf %319, %412 : vector<8x128xf32>
    %414 = arith.addf %411, %413 : vector<8x128xf32>
    %415 = vector.broadcast %101 : f32 to vector<8x128xf32>
    %416 = arith.mulf %346, %415 : vector<8x128xf32>
    %417 = arith.addf %414, %416 : vector<8x128xf32>
    %418 = vector.broadcast %102 : f32 to vector<8x128xf32>
    %419 = arith.mulf %373, %418 : vector<8x128xf32>
    %420 = arith.addf %417, %419 : vector<8x128xf32>
    %421 = vector.broadcast %103 : f32 to vector<8x128xf32>
    %422 = arith.mulf %400, %421 : vector<8x128xf32>
    %423 = arith.addf %420, %422 : vector<8x128xf32>
    %424 = vector.broadcast %104 : f32 to vector<8x128xf32>
    %425 = arith.addf %423, %424 : vector<8x128xf32>
    %426 = arith.index_cast %106 : i32 to index
    %c0_202 = arith.constant 0 : index
    %427 = vector.load %arg8[%426, %c0_202] : memref<8x128xf32, #tpu.memory_space<vmem>>, vector<8x128xf32>
    tpu.vector_store %arg8[%426, %c0_202], %425 {strides = array<i32>} : memref<8x128xf32, #tpu.memory_space<vmem>>, vector<8x128xf32>,
    %c1_i32 = arith.constant 1 : i32
    return
  }
  func.func @transform_0(%arg0: i32) -> (i32, i32, i32) {
    %c0_i32 = arith.constant 0 : i32
    %c0_i32_0 = arith.constant 0 : i32
    %c0_i32_1 = arith.constant 0 : i32
    return %c0_i32, %arg0, %c0_i32_0 : i32, i32, i32
  }
  func.func @transform_1(%arg0: i32) -> (i32, i32) {
    %c0_i32 = arith.constant 0 : i32
    %c0_i32_0 = arith.constant 0 : i32
    %c0_i32_1 = arith.constant 0 : i32
    return %c0_i32, %c0_i32_0 : i32, i32
  }
  func.func @transform_2(%arg0: i32) -> i32 {
    %c0_i32 = arith.constant 0 : i32
    %c0_i32_0 = arith.constant 0 : i32
    return %c0_i32 : i32
  }
  func.func @transform_3(%arg0: i32) -> (i32, i32) {
    %c0_i32 = arith.constant 0 : i32
    %c0_i32_0 = arith.constant 0 : i32
    %c0_i32_1 = arith.constant 0 : i32
    return %c0_i32, %c0_i32_0 : i32, i32
  }
  func.func @transform_4(%arg0: i32) -> i32 {
    %c0_i32 = arith.constant 0 : i32
    %c0_i32_0 = arith.constant 0 : i32
    return %c0_i32 : i32
  }
  func.func @transform_5(%arg0: i32) -> (i32, i32) {
    %c0_i32 = arith.constant 0 : i32
    %c0_i32_0 = arith.constant 0 : i32
    %c0_i32_1 = arith.constant 0 : i32
    return %c0_i32, %c0_i32_0 : i32, i32
  }
  func.func @transform_6(%arg0: i32) -> i32 {
    %c0_i32 = arith.constant 0 : i32
    %c0_i32_0 = arith.constant 0 : i32
    return %c0_i32 : i32
  }
  func.func @transform_7(%arg0: i32) -> (i32, i32) {
    %c0_i32 = arith.constant 0 : i32
    %c0_i32_0 = arith.constant 0 : i32
    return %arg0, %c0_i32 : i32, i32
  }
}

</mosaic_0001>

<bundles_post_ra>
// kernel: circle_model_forward.1
= control target key start
LH: loop header
LB: loop body
LE: loop exit
PB: predicated region body
PF: predicated region fallthrough
CT: control target
= control target key end

     0   :  { %13 = vsyncpa [#allocation4], 0  ;;  %s1146_s0 = inlined_call_operand.vmem [shape: f32[2,8,128], index: 0, kind: input, shape index: {}]   ;;  %s1147_s1 = inlined_call_operand.vmem [shape: f32[2,8], index: 1, kind: input, shape index: {}]   ;;  %s1148_s2 = inlined_call_operand.vmem [shape: f32[8], index: 2, kind: input, shape index: {}]   ;;  %s1149_s3 = inlined_call_operand.vmem [shape: f32[8,8], index: 3, kind: input, shape index: {}]   ;;  %s1150_s4 = inlined_call_operand.vmem [shape: f32[8], index: 4, kind: input, shape index: {}]   ;;  %s1151_s5 = inlined_call_operand.vmem [shape: f32[8,1], index: 5, kind: input, shape index: {}]   ;;  %s1152_s6 = inlined_call_operand.<no memory space> [shape: f32[1], index: 6, kind: input, shape index: {}]   ;;  %s1153_s7 = inlined_call_operand.vmem [shape: f32[8,128], index: 7, kind: output, shape index: {}]  }
   0x1   :  { %14 = vsyncpa [#allocation6], 0  ;;  %s34_s26 = sshll.u32 %s1148_s2, 4  ;;  %s35_s26 = int_to_ptr.vmem [resolvable:$true] %s34_s26 }
   0x2   :  { %15 = vsyncpa [#allocation9], 0  ;;  %s54_s29 = sshll.u32 %s1150_s4, 4  ;;  %s602_s30 = scalar_lea.vmem %s35_s26, 16  ;;  %s55_s29 = int_to_ptr.vmem [resolvable:$true] %s54_s29 }
   0x3   :  { %p603_p0 = scmp.ne.s32.totalorder %s35_s26, %s602_s30  ;;  %p607_p1 = scmp.lt.s32.totalorder %s35_s26, %s35_s26 }
   0x4   :  { %p608_p2 = scmp.lt.s32.totalorder %s602_s30, %s602_s30 }
   0x6   :  { %p609_p3 = por %p608_p2, %p607_p1 }
   0x8   :  { %p610_p4 = pnand %p609_p3, %p603_p0 }
   0xa   :  { %613 = shalt.err (!%p610_p4)
}
   0xb   :  { %s668_s8 = smov [#allocation5]   ;;  %s614_s9 = scalar_lea.vmem %s55_s29, 16 }
   0xc   :  { %37 = dma.vmem_to_smem %s35_s26, 16, %s668_s8, [#allocation6]  }
   0xd   :  { %p615_p5 = scmp.ne.s32.totalorder %s55_s29, %s614_s9  ;;  %p619_p6 = scmp.lt.s32.totalorder %s55_s29, %s55_s29 }
   0xe   :  { %p620_p7 = scmp.lt.s32.totalorder %s614_s9, %s614_s9 }
  0x10   :  { %p621_p8 = por %p620_p7, %p619_p6 }
  0x12   :  { %p622_p9 = pnand %p621_p8, %p615_p5 }
  0x14   :  { %625 = shalt.err (!%p622_p9)
}
  0x15   :  { %s669_s2 = smov [#allocation8]   ;;  %s24_s11 = sshll.u32 %s1147_s1, 4  ;;  %s25_s11 = int_to_ptr.vmem [resolvable:$true] %s24_s11 }
  0x16   :  { %57 = dma.vmem_to_smem %s55_s29, 16, %s669_s2, [#allocation9]  }
  0x17   :  { %s44_s14 = sshll.u32 %s1149_s3, 4  ;;  %s626_s15 = scalar_lea.vmem %s25_s11, 32  ;;  %s45_s14 = int_to_ptr.vmem [resolvable:$true] %s44_s14 }
  0x18   :  { %p627_p10 = scmp.ne.s32.totalorder %s25_s11, %s626_s15  ;;  %p631_p11 = scmp.lt.s32.totalorder %s25_s11, %s25_s11 }
  0x19   :  { %p632_p12 = scmp.lt.s32.totalorder %s626_s15, %s626_s15 }
  0x1b   :  { %p633_p13 = por %p632_p12, %p631_p11 }
  0x1d   :  { %p634_p0 = pnand %p633_p13, %p627_p10 }
  0x1f   :  { %637 = shalt.err (!%p634_p0)
}
  0x20   :  { %s670_s16 = smov [#allocation3]   ;;  %s638_s17 = scalar_lea.vmem %s45_s14, 128 }
  0x21   :  { %27 = dma.vmem_to_smem %s25_s11, 32, %s670_s16, [#allocation4]  }
  0x22   :  { %p639_p1 = scmp.ne.s32.totalorder %s45_s14, %s638_s17  ;;  %p643_p2 = scmp.lt.s32.totalorder %s45_s14, %s45_s14 }
  0x23   :  { %p644_p3 = scmp.lt.s32.totalorder %s638_s17, %s638_s17 }
  0x25   :  { %p645_p4 = por %p644_p3, %p643_p2 }
  0x27   :  { %p646_p5 = pnand %p645_p4, %p639_p1 }
  0x29   :  { %649 = shalt.err (!%p646_p5)
}
  0x2a   :  { %s671_s1 = smov [#allocation7]   ;;  %s64_s19 = sshll.u32 %s1151_s5, 4  ;;  %s65_s19 = int_to_ptr.vmem [resolvable:$true] %s64_s19 }
  0x2b   :  { %47 = dma.vmem_to_smem %s45_s14, 128, %s671_s1, [#allocation6]  }
  0x2c   :  { %s650_s20 = scalar_lea.vmem %s65_s19, 128  ;;  %p655_p7 = scmp.lt.s32.totalorder %s65_s19, %s65_s19 }
  0x2d   :  { %p651_p6 = scmp.ne.s32.totalorder %s65_s19, %s650_s20  ;;  %p656_p8 = scmp.lt.s32.totalorder %s650_s20, %s650_s20 }
  0x2f   :  { %p657_p9 = por %p656_p8, %p655_p7 }
  0x31   :  { %p658_p10 = pnand %p657_p9, %p651_p6 }
  0x33   :  { %661 = shalt.err (!%p658_p10)
}
  0x34   :  { %s672_s21 = smov [#allocation10]  }
  0x35   :  { %67 = dma.vmem_to_smem %s65_s19, 128, %s672_s21, [#allocation9]  }
  0x36   :  { %662 = dma.done.wait [#allocation4], 32  }
  0x37   :  { %663 = vsyncadd [#allocation4], 4294967264 }
  0x38   :  { %664 = dma.done.wait [#allocation6], 144  }
  0x39   :  { %665 = vsyncadd [#allocation6], 4294967152 }
  0x3a   :  { %666 = dma.done.wait [#allocation9], 144  }
  0x3b   :  { %667 = vsyncadd [#allocation9], 4294967152 }
  0x3c   :  { %85 = sfence }
  0x3d   :  { %s86_s22 = sld [smem:[#allocation3]]  ;;  %s498_s23 = sld [smem:[#allocation3 + $0x1]]  ;;  %v191_v0 = vld [vmem:[%s1146_s0] sm:$0xff]  ;;  %v756_v7 = vld [vmem:[%s1146_s0 + $0x8] sm:$0xff] }
  0x3e   :  { %s499_s5 = sld [smem:[#allocation3 + $0x2]]  ;;  %s500_s24 = sld [smem:[#allocation3 + $0x3]] }
  0x3f   :  { %s501_s25 = sld [smem:[#allocation3 + $0x4]]  ;;  %s502_s26 = sld [smem:[#allocation3 + $0x5]] }
  0x40   :  { %s728_s27 = sld [smem:[#allocation3 + $0x6]]  ;;  %s730_s28 = sld [smem:[#allocation3 + $0x7]] }
  0x41   :  { %s732_s29 = sld [smem:[#allocation3 + $0x80]]  ;;  %s734_s30 = sld [smem:[#allocation3 + $0x81]] }
  0x42   :  { %s739_s2 = sld [smem:[#allocation3 + $0x82]]  ;;  %s741_s4 = sld [smem:[#allocation3 + $0x83]] }
  0x43   :  { %s743_s10 = sld [smem:[#allocation3 + $0x84]]  ;;  %s745_s11 = sld [smem:[#allocation3 + $0x85]]  ;;  %v193_v1 = vstv %s86_s22  ;;  %v201_v2 = vstv %s498_s23 }
  0x44   :  { %s747_s12 = sld [smem:[#allocation3 + $0x86]]  ;;  %v194_v3 = vmul.f32 %v193_v1, %v191_v0  ;;  %v202_v4 = vmul.f32 %v201_v2, %v191_v0  ;;  %v209_v5 = vstv %s499_s5  ;;  %v217_v6 = vstv %s500_s24  ;;  %s749_s13 = sld [smem:[#allocation5]] }
  0x45   :  { %s751_s14 = sld [smem:[#allocation5 + $0x1]]  ;;  %v210_v8 = vmul.f32 %v209_v5, %v191_v0  ;;  %v218_v9 = vmul.f32 %v217_v6, %v191_v0  ;;  %v225_v10 = vstv %s501_s25  ;;  %v233_v11 = vstv %s502_s26  ;;  %s758_s17 = sld [smem:[#allocation5 + $0x2]] }
  0x46   :  { %s760_s1 = sld [smem:[#allocation5 + $0x3]]  ;;  %v226_v12 = vmul.f32 %v225_v10, %v191_v0  ;;  %v234_v13 = vmul.f32 %v233_v11, %v191_v0  ;;  %v241_v14 = vstv %s728_s27  ;;  %v249_v15 = vstv %s730_s28  ;;  %s764_s3 = sld [smem:[#allocation5 + $0x4]] }
  0x47   :  { %s766_s18 = sld [smem:[#allocation5 + $0x5]]  ;;  %v195_v16 = vstv %s732_s29  ;;  %v203_v17 = vstv %s734_s30  ;;  %v242_v18 = vmul.f32 %v241_v14, %v191_v0  ;;  %v250_v19 = vmul.f32 %v249_v15, %v191_v0  ;;  %s770_s0 = sld [smem:[#allocation3 + $0x87]] }
  0x48   :  { %s772_s19 = sld [smem:[#allocation5 + $0x6]]  ;;  %v196_v20 = vmul.f32 %v195_v16, %v756_v7  ;;  %v204_v21 = vmul.f32 %v203_v17, %v756_v7  ;;  %v211_v22 = vstv %s739_s2  ;;  %v219_v23 = vstv %s741_s4  ;;  %s778_s20 = sld [smem:[#allocation5 + $0x7]] }
  0x49   :  { %s780_s21 = sld [smem:[#allocation7]]  ;;  %v212_v24 = vmul.f32 %v211_v22, %v756_v7  ;;  %v220_v25 = vmul.f32 %v219_v23, %v756_v7  ;;  %v227_v26 = vstv %s743_s10  ;;  %v235_v27 = vstv %s745_s11  ;;  %s786_s22 = sld [smem:[#allocation7 + $0x1]] }
  0x4a   :  { %v197_v28 = vadd.f32 %v196_v20, %v194_v3  ;;  %v205_v29 = vadd.f32 %v204_v21, %v202_v4  ;;  %v228_v30 = vmul.f32 %v227_v26, %v756_v7  ;;  %v236_v31 = vmul.f32 %v235_v27, %v756_v7  ;;  %s792_s23 = sld [smem:[#allocation7 + $0x2]]  ;;  %s794_s5 = sld [smem:[#allocation7 + $0x3]] }
  0x4b   :  { %v198_v32 = vstv %s749_s13  ;;  %v206_v33 = vstv %s751_s14  ;;  %v213_v34 = vadd.f32 %v212_v24, %v210_v8  ;;  %v221_v35 = vadd.f32 %v220_v25, %v218_v9  ;;  %s798_s24 = sld [smem:[#allocation7 + $0x80]]  ;;  %s800_s25 = sld [smem:[#allocation7 + $0x81]] }
  0x4c   :  { %v199_v36 = vadd.f32 %v198_v32, %v197_v28  ;;  %v207_v37 = vadd.f32 %v206_v33, %v205_v29  ;;  %v214_v38 = vstv %s758_s17  ;;  %v222_v39 = vstv %s760_s1  ;;  %s803_s26 = sld [smem:[#allocation7 + $0x82]]  ;;  %s815_s27 = sld [smem:[#allocation7 + $0x4]] }
  0x4d   :  { %v215_v40 = vadd.f32 %v214_v38, %v213_v34  ;;  %v223_v41 = vadd.f32 %v222_v39, %v221_v35  ;;  %v229_v42 = vadd.f32 %v228_v30, %v226_v12  ;;  %v230_v43 = vstv %s764_s3  ;;  %s817_s28 = sld [smem:[#allocation7 + $0x83]]  ;;  %s822_s29 = sld [smem:[#allocation7 + $0x100]] }
  0x4e   :  { %v805_v44 = vmax.f32 %v199_v36, 0.0  ;;  %v807_v45 = vmax.f32 %v207_v37, 0.0  ;;  %v237_v46 = vadd.f32 %v236_v31, %v234_v13  ;;  %v238_v47 = vstv %s766_s18  ;;  %s824_s30 = sld [smem:[#allocation7 + $0x101]]  ;;  %s831_s8 = sld [smem:[#allocation7 + $0x102]] }
  0x4f   :  { %v810_v48 = vmax.f32 %v215_v40, 0.0  ;;  %v812_v49 = vmax.f32 %v223_v41, 0.0  ;;  %v231_v50 = vadd.f32 %v230_v43, %v229_v42  ;;  %v243_v51 = vstv %s747_s12  ;;  %s833_s9 = sld [smem:[#allocation7 + $0x103]]  ;;  %s842_s2 = sld [smem:[#allocation7 + $0x84]] }
  0x50   :  { %v239_v52 = vadd.f32 %v238_v47, %v237_v46  ;;  %v244_v53 = vmul.f32 %v243_v51, %v756_v7  ;;  %v246_v54 = vstv %s772_s19  ;;  %v251_v55 = vstv %s770_s0  ;;  %s844_s4 = sld [smem:[#allocation7 + $0x104]]  ;;  %s849_s10 = sld [smem:[#allocation7 + $0x180]] }
  0x51   :  { %v826_v56 = vmax.f32 %v231_v50, 0.0  ;;  %v252_v57 = vmul.f32 %v251_v55, %v756_v7  ;;  %v254_v58 = vstv %s778_s20  ;;  %v257_v59 = vstv %s780_s21  ;;  %s851_s11 = sld [smem:[#allocation7 + $0x181]]  ;;  %s856_s12 = sld [smem:[#allocation7 + $0x182]] }
  0x52   :  { %v835_v60 = vmax.f32 %v239_v52, 0.0  ;;  %v245_v61 = vadd.f32 %v244_v53, %v242_v18  ;;  %v258_v62 = vmul.f32 %v257_v59, %v805_v44  ;;  %v283_v63 = vstv %s786_s22  ;;  %s858_s13 = sld [smem:[#allocation7 + $0x183]]  ;;  %s868_s14 = sld [smem:[#allocation7 + $0x184]] }
  0x53   :  { %v253_v0 = vadd.f32 %v252_v57, %v250_v19  ;;  %v259_v1 = vstv %s798_s24  ;;  %v284_v2 = vmul.f32 %v283_v63, %v805_v44  ;;  %v285_v3 = vstv %s800_s25  ;;  %s873_s15 = sld [smem:[#allocation7 + $0x200]]  ;;  %s875_s16 = sld [smem:[#allocation7 + $0x201]] }
  0x54   :  { %v247_v4 = vadd.f32 %v246_v54, %v245_v61  ;;  %v260_v5 = vmul.f32 %v259_v1, %v807_v45  ;;  %v286_v6 = vmul.f32 %v285_v3, %v807_v45  ;;  %v309_v7 = vstv %s792_s23  ;;  %s881_s17 = sld [smem:[#allocation7 + $0x202]]  ;;  %s883_s1 = sld [smem:[#allocation7 + $0x203]] }
  0x55   :  { %v255_v8 = vadd.f32 %v254_v58, %v253_v0  ;;  %v310_v9 = vmul.f32 %v309_v7, %v805_v44  ;;  %v311_v10 = vstv %s803_s26  ;;  %v335_v11 = vstv %s794_s5  ;;  %s890_s3 = sld [smem:[#allocation7 + $0x204]]  ;;  %s895_s18 = sld [smem:[#allocation7 + $0x280]] }
  0x56   :  { %v860_v12 = vmax.f32 %v247_v4, 0.0  ;;  %v261_v13 = vadd.f32 %v260_v5, %v258_v62  ;;  %v287_v14 = vadd.f32 %v286_v6, %v284_v2  ;;  %v312_v15 = vmul.f32 %v311_v10, %v807_v45  ;;  %s897_s0 = sld [smem:[#allocation7 + $0x281]]  ;;  %s903_s19 = sld [smem:[#allocation7 + $0x282]] }
  0x57   :  { %v863_v16 = vmax.f32 %v255_v8, 0.0  ;;  %v262_v17 = vstv %s822_s29  ;;  %v288_v18 = vstv %s824_s30  ;;  %v336_v19 = vmul.f32 %v335_v11, %v805_v44  ;;  %s905_s20 = sld [smem:[#allocation7 + $0x283]]  ;;  %s911_s21 = sld [smem:[#allocation7 + $0x284]] }
  0x58   :  { %v263_v20 = vmul.f32 %v262_v17, %v810_v48  ;;  %v289_v21 = vmul.f32 %v288_v18, %v810_v48  ;;  %v313_v22 = vadd.f32 %v312_v15, %v310_v9  ;;  %v314_v23 = vstv %s831_s8  ;;  %s916_s22 = sld [smem:[#allocation7 + $0x300]]  ;;  %s918_s23 = sld [smem:[#allocation7 + $0x301]] }
  0x59   :  { %v315_v24 = vmul.f32 %v314_v23, %v810_v48  ;;  %v337_v25 = vstv %s817_s28  ;;  %v340_v26 = vstv %s833_s9  ;;  %v361_v27 = vstv %s815_s27  ;;  %s923_s5 = sld [smem:[#allocation7 + $0x302]]  ;;  %s925_s24 = sld [smem:[#allocation7 + $0x303]] }
  0x5a   :  { %v264_v28 = vadd.f32 %v263_v20, %v261_v13  ;;  %v290_v29 = vadd.f32 %v289_v21, %v287_v14  ;;  %v338_v30 = vmul.f32 %v337_v25, %v807_v45  ;;  %v341_v31 = vmul.f32 %v340_v26, %v810_v48  ;;  %s929_s25 = sld [smem:[#allocation7 + $0x304]]  ;;  %s936_s26 = sld [smem:[#allocation7 + $0x380]] }
  0x5b   :  { %v265_v32 = vstv %s849_s10  ;;  %v291_v33 = vstv %s851_s11  ;;  %v316_v34 = vadd.f32 %v315_v24, %v313_v22  ;;  %v362_v35 = vmul.f32 %v361_v27, %v805_v44  ;;  %s938_s27 = sld [smem:[#allocation7 + $0x381]]  ;;  %s944_s28 = sld [smem:[#allocation7 + $0x382]] }
  0x5c   :  { %v266_v36 = vmul.f32 %v265_v32, %v812_v49  ;;  %v292_v37 = vmul.f32 %v291_v33, %v812_v49  ;;  %v317_v38 = vstv %s856_s12  ;;  %v339_v39 = vadd.f32 %v338_v30, %v336_v19  ;;  %s946_s29 = sld [smem:[#allocation7 + $0x383]]  ;;  %s950_s30 = sld [smem:[#allocation7 + $0x384]] }
  0x5d   :  { %v318_v40 = vmul.f32 %v317_v38, %v812_v49  ;;  %v343_v41 = vstv %s858_s13  ;;  %v363_v42 = vstv %s842_s2  ;;  %v366_v43 = vstv %s844_s4  ;;  %s954_s8 = sld [smem:[#allocation7 + $0x5]]  ;;  %s959_s9 = sld [smem:[#allocation8]] }
  0x5e   :  { %v267_v46 = vadd.f32 %v266_v36, %v264_v28  ;;  %v293_v47 = vadd.f32 %v292_v37, %v290_v29  ;;  %v342_v50 = vadd.f32 %v341_v31, %v339_v39  ;;  %v344_v51 = vmul.f32 %v343_v41, %v812_v49  ;;  %s961_s2 = sld [smem:[#allocation8 + $0x1]]  ;;  %s966_s4 = sld [smem:[#allocation8 + $0x2]] }
  0x5f   :  { %v268_v52 = vstv %s873_s15  ;;  %v294_v53 = vstv %s875_s16  ;;  %v319_v54 = vadd.f32 %v318_v40, %v316_v34  ;;  %v364_v55 = vmul.f32 %v363_v42, %v807_v45  ;;  %s968_s10 = sld [smem:[#allocation8 + $0x3]]  ;;  %s972_s11 = sld [smem:[#allocation7 + $0x85]] }
  0x60   :  { %v269_v57 = vmul.f32 %v268_v52, %v826_v56  ;;  %v295_v58 = vmul.f32 %v294_v53, %v826_v56  ;;  %v320_v59 = vstv %s881_s17  ;;  %v345_v61 = vadd.f32 %v344_v51, %v342_v50  ;;  %s974_s12 = sld [smem:[#allocation7 + $0x105]]  ;;  %s991_s16 = sld [smem:[#allocation7 + $0x6]] }
  0x61   :  { %v321_v62 = vmul.f32 %v320_v59, %v826_v56  ;;  %v346_v63 = vstv %s883_s1  ;;  %v365_v0 = vadd.f32 %v364_v55, %v362_v35  ;;  %v367_v1 = vmul.f32 %v366_v43, %v810_v48  ;;  %s979_s13 = sld [smem:[#allocation7 + $0x185]]  ;;  %s995_s17 = sld [smem:[#allocation7 + $0x86]] }
  0x62   :  { %v270_v2 = vadd.f32 %v269_v57, %v267_v46  ;;  %v296_v3 = vadd.f32 %v295_v58, %v293_v47  ;;  %v347_v4 = vmul.f32 %v346_v63, %v826_v56  ;;  %v369_v5 = vstv %s868_s14  ;;  %s981_s14 = sld [smem:[#allocation8 + $0x4]]  ;;  %s986_s15 = sld [smem:[#allocation7 + $0x205]] }
  0x63   :  { %v271_v6 = vstv %s895_s18  ;;  %v297_v7 = vstv %s897_s0  ;;  %v322_v8 = vadd.f32 %v321_v62, %v319_v54  ;;  %v368_v9 = vadd.f32 %v367_v1, %v365_v0  ;;  %s997_s1 = sld [smem:[#allocation7 + $0x285]]  ;;  %s1006_s0 = sld [smem:[#allocation7 + $0x106]] }
  0x64   :  { %v272_v10 = vmul.f32 %v271_v6, %v835_v60  ;;  %v298_v11 = vmul.f32 %v297_v7, %v835_v60  ;;  %v323_v13 = vstv %s903_s19  ;;  %v348_v14 = vadd.f32 %v347_v4, %v345_v61  ;;  %s1003_s18 = sld [smem:[#allocation7 + $0x385]]  ;;  %s1008_s19 = sld [smem:[#allocation7 + $0x186]] }
  0x65   :  { %v324_v15 = vmul.f32 %v323_v13, %v835_v60  ;;  %v349_v17 = vstv %s905_s20  ;;  %v370_v18 = vmul.f32 %v369_v5, %v812_v49  ;;  %v372_v19 = vstv %s890_s3  ;;  %s1001_s3 = sld [smem:[#allocation7 + $0x305]]  ;;  %s1019_s20 = sld [smem:[#allocation7 + $0x206]] }
  0x66   :  { %v273_v20 = vadd.f32 %v272_v10, %v270_v2  ;;  %v299_v21 = vadd.f32 %v298_v11, %v296_v3  ;;  %v350_v22 = vmul.f32 %v349_v17, %v835_v60  ;;  %v373_v23 = vmul.f32 %v372_v19, %v826_v56 }
  0x67   :  { %v274_v24 = vstv %s916_s22  ;;  %v300_v25 = vstv %s918_s23  ;;  %v325_v26 = vadd.f32 %v324_v15, %v322_v8  ;;  %v371_v27 = vadd.f32 %v370_v18, %v368_v9  ;;  %s1027_s22 = sld [smem:[#allocation7 + $0x286]] }
  0x68   :  { %v275_v28 = vmul.f32 %v274_v24, %v860_v12  ;;  %v301_v29 = vmul.f32 %v300_v25, %v860_v12  ;;  %v326_v30 = vstv %s923_s5  ;;  %v351_v31 = vadd.f32 %v350_v22, %v348_v14  ;;  %s1033_s23 = sld [smem:[#allocation7 + $0x306]] }
  0x69   :  { %v327_v32 = vmul.f32 %v326_v30, %v860_v12  ;;  %v352_v33 = vstv %s925_s24  ;;  %v374_v34 = vadd.f32 %v373_v23, %v371_v27  ;;  %v375_v35 = vstv %s911_s21  ;;  %s1025_s21 = sld [smem:[#allocation7 + $0x7]]  ;;  %s1035_s5 = sld [smem:[#allocation7 + $0x386]] }
  0x6a   :  { %v276_v36 = vadd.f32 %v275_v28, %v273_v20  ;;  %v302_v37 = vadd.f32 %v301_v29, %v299_v21  ;;  %v353_v38 = vmul.f32 %v352_v33, %v860_v12  ;;  %v376_v39 = vmul.f32 %v375_v35, %v835_v60  ;;  %s1040_s24 = sld [smem:[#allocation7 + $0x87]] }
  0x6b   :  { %v277_v40 = vstv %s936_s26  ;;  %v303_v41 = vstv %s938_s27  ;;  %v328_v42 = vadd.f32 %v327_v32, %v325_v26  ;;  %v378_v43 = vstv %s929_s25  ;;  %s1045_s25 = sld [smem:[#allocation7 + $0x107]] }
  0x6c   :  { %v278_v46 = vmul.f32 %v277_v40, %v863_v16  ;;  %v304_v47 = vmul.f32 %v303_v41, %v863_v16  ;;  %v329_v50 = vstv %s944_s28  ;;  %v354_v51 = vadd.f32 %v353_v38, %v351_v31  ;;  %s1047_s26 = sld [smem:[#allocation7 + $0x187]] }
  0x6d   :  { %v330_v52 = vmul.f32 %v329_v50, %v863_v16  ;;  %v355_v53 = vstv %s946_s29  ;;  %v377_v54 = vadd.f32 %v376_v39, %v374_v34  ;;  %v379_v55 = vmul.f32 %v378_v43, %v860_v12  ;;  %s1054_s27 = sld [smem:[#allocation7 + $0x207]]  ;;  %s1061_s29 = sld [smem:[#allocation8 + $0x5]] }
  0x6e   :  { %v279_v57 = vadd.f32 %v278_v46, %v276_v36  ;;  %v305_v58 = vadd.f32 %v304_v47, %v302_v37  ;;  %v356_v59 = vmul.f32 %v355_v53, %v863_v16  ;;  %v381_v61 = vstv %s950_s30  ;;  %s1059_s28 = sld [smem:[#allocation7 + $0x287]] }
  0x6f   :  { %v280_v62 = vstv %s959_s9  ;;  %v306_v63 = vstv %s961_s2  ;;  %v331_v0 = vadd.f32 %v330_v52, %v328_v42  ;;  %v380_v1 = vadd.f32 %v379_v55, %v377_v54  ;;  %s1070_s30 = sld [smem:[#allocation7 + $0x307]]  ;;  %s1078_s9 = sld [smem:[#allocation10 + $0x80]] }
  0x70   :  { %v332_v2 = vstv %s966_s4  ;;  %v357_v3 = vadd.f32 %v356_v59, %v354_v51  ;;  %v1010_v4 = vadd.f32 %v280_v62, %v279_v57  ;;  %v358_v5 = vstv %s968_s10  ;;  %s1082_s2 = sld [smem:[#allocation10 + $0x100]]  ;;  %s1090_s10 = sld [smem:[#allocation7 + $0x387]] }
  0x71   :  { %v382_v6 = vmul.f32 %v381_v61, %v863_v16  ;;  %v1014_v7 = vadd.f32 %v306_v63, %v305_v58  ;;  %v1016_v8 = vadd.f32 %v332_v2, %v331_v0  ;;  %v387_v9 = vstv %s954_s8  ;;  %s1072_s8 = sld [smem:[#allocation10]] }
  0x72   :  { %v1021_v10 = vadd.f32 %v358_v5, %v357_v3  ;;  %v388_v13 = vmul.f32 %v387_v9, %v805_v44  ;;  %v389_v14 = vstv %s972_s11  ;;  %v384_v15 = vstv %s981_s14  ;;  %s1084_s4 = sld [smem:[#allocation10 + $0x180]]  ;;  %s1094_s11 = sld [smem:[#allocation8 + $0x6]] }
  0x73   :  { %v383_v11 = vadd.f32 %v382_v6, %v380_v1  ;;  %v390_v17 = vmul.f32 %v389_v14, %v807_v45  ;;  %v392_v18 = vstv %s974_s12  ;;  %v395_v19 = vstv %s979_s13  ;;  %s1096_s12 = sld [smem:[#allocation10 + $0x200]] }
  0x74   :  { %v282_v20 = vmax.f32 %v1010_v4, 0.0  ;;  %v393_v21 = vmul.f32 %v392_v18, %v810_v48  ;;  %v398_v22 = vstv %s986_s15  ;;  %v308_v23 = vmax.f32 %v1014_v7, 0.0  ;;  %s1104_s13 = sld [smem:[#allocation10 + $0x280]]  ;;  %s1116_s15 = sld [smem:[#allocation8 + $0x7]] }
  0x75   :  { %v334_v24 = vmax.f32 %v1016_v8, 0.0  ;;  %v391_v25 = vadd.f32 %v390_v17, %v388_v13  ;;  %v396_v26 = vmul.f32 %v395_v19, %v812_v49  ;;  %v360_v27 = vmax.f32 %v1021_v10, 0.0  ;;  %s1111_s14 = sld [smem:[#allocation10 + $0x300]] }
  0x76   :  { %v1050_v28 = vadd.f32 %v384_v15, %v383_v11  ;;  %v399_v29 = vmul.f32 %v398_v22, %v826_v56  ;;  %v401_v30 = vstv %s997_s1  ;;  %v404_v32 = vstv %s1001_s3 }
  0x77   :  { %v394_v31 = vadd.f32 %v393_v21, %v391_v25  ;;  %v407_v33 = vstv %s1003_s18  ;;  %v413_v34 = vstv %s991_s16  ;;  %v415_v36 = vstv %s995_s17  ;;  %s596_s16 = sld [smem:[#allocation10 + $0x380]] }
  0x78   :  { %v414_v35 = vmul.f32 %v413_v34, %v805_v44  ;;  %v418_v37 = vstv %s1006_s0  ;;  %v421_v38 = vstv %s1008_s19  ;;  %v402_v40 = vmul.f32 %v401_v30, %v835_v60 }
  0x79   :  { %v397_v39 = vadd.f32 %v396_v26, %v394_v31  ;;  %v416_v41 = vmul.f32 %v415_v36, %v807_v45  ;;  %v419_v42 = vmul.f32 %v418_v37, %v810_v48  ;;  %v386_v43 = vmax.f32 %v1050_v28, 0.0 }
  0x7a   :  { %v405_v46 = vmul.f32 %v404_v32, %v860_v12  ;;  %v408_v47 = vmul.f32 %v407_v33, %v863_v16  ;;  %v424_v50 = vstv %s1019_s20  ;;  %v422_v53 = vmul.f32 %v421_v38, %v812_v49 }
  0x7b   :  { %v400_v51 = vadd.f32 %v399_v29, %v397_v39  ;;  %v417_v52 = vadd.f32 %v416_v41, %v414_v35  ;;  %v427_v54 = vstv %s1027_s22  ;;  %v425_v55 = vmul.f32 %v424_v50, %v826_v56 }
  0x7c   :  { %v430_v57 = vstv %s1033_s23  ;;  %v433_v58 = vstv %s1035_s5  ;;  %v439_v59 = vstv %s1025_s21  ;;  %v441_v0 = vstv %s1040_s24 }
  0x7d   :  { %v403_v61 = vadd.f32 %v402_v40, %v400_v51  ;;  %v420_v62 = vadd.f32 %v419_v42, %v417_v52  ;;  %v440_v63 = vmul.f32 %v439_v59, %v805_v44  ;;  %v428_v1 = vmul.f32 %v427_v54, %v835_v60 }
  0x7e   :  { %v442_v2 = vmul.f32 %v441_v0, %v807_v45  ;;  %v444_v3 = vstv %s1045_s25  ;;  %v447_v5 = vstv %s1047_s26  ;;  %v450_v13 = vstv %s1054_s27 }
  0x7f   :  { %v406_v6 = vadd.f32 %v405_v46, %v403_v61  ;;  %v423_v9 = vadd.f32 %v422_v53, %v420_v62  ;;  %v445_v11 = vmul.f32 %v444_v3, %v810_v48  ;;  %v410_v44 = vstv %s1061_s29 }
  0x80   :  { %v443_v14 = vadd.f32 %v442_v2, %v440_v63  ;;  %v448_v15 = vmul.f32 %v447_v5, %v812_v49  ;;  %v453_v17 = vstv %s1059_s28  ;;  %v431_v19 = vmul.f32 %v430_v57, %v860_v12 }
  0x81   :  { %v409_v18 = vadd.f32 %v408_v47, %v406_v6  ;;  %v426_v45 = vadd.f32 %v425_v55, %v423_v9  ;;  %v434_v21 = vmul.f32 %v433_v58, %v863_v16  ;;  %v451_v22 = vmul.f32 %v450_v13, %v826_v56 }
  0x82   :  { %v446_v48 = vadd.f32 %v445_v11, %v443_v14  ;;  %v456_v25 = vstv %s1070_s30  ;;  %v465_v26 = vstv %s1072_s8  ;;  %v454_v30 = vmul.f32 %v453_v17, %v835_v60 }
  0x83   :  { %v411_v49 = vadd.f32 %v410_v44, %v409_v18  ;;  %v429_v29 = vadd.f32 %v428_v1, %v426_v45  ;;  %v466_v31 = vmul.f32 %v465_v26, %v282_v20  ;;  %v467_v33 = vstv %s1078_s9 }
  0x84   :  { %v449_v32 = vadd.f32 %v448_v15, %v446_v48  ;;  %v470_v34 = vstv %s1082_s2  ;;  %v473_v35 = vstv %s1084_s4  ;;  %v459_v56 = vstv %s1090_s10 }
  0x85   :  { %v432_v36 = vadd.f32 %v431_v19, %v429_v29  ;;  %v468_v37 = vmul.f32 %v467_v33, %v308_v23  ;;  %v471_v38 = vmul.f32 %v470_v34, %v334_v24  ;;  %v436_v39 = vstv %s1094_s11 }
  0x86   :  { %v452_v40 = vadd.f32 %v451_v22, %v449_v32  ;;  %v457_v60 = vmul.f32 %v456_v25, %v860_v12  ;;  %v476_v4 = vstv %s1096_s12  ;;  %v412_v20 = vmax.f32 %v411_v49, 0.0 }
  0x87   :  { %v435_v41 = vadd.f32 %v434_v21, %v432_v36  ;;  %v469_v42 = vadd.f32 %v468_v37, %v466_v31  ;;  %v474_v46 = vmul.f32 %v473_v35, %v360_v27  ;;  %v460_v7 = vmul.f32 %v459_v56, %v863_v16 }
  0x88   :  { %v455_v47 = vadd.f32 %v454_v30, %v452_v40  ;;  %v479_v23 = vstv %s1104_s13  ;;  %v477_v50 = vmul.f32 %v476_v4, %v386_v43  ;;  %v482_v12 = vstv %s1111_s14 }
  0x89   :  { %v437_v8 = vadd.f32 %v436_v39, %v435_v41  ;;  %v472_v24 = vadd.f32 %v471_v38, %v469_v42  ;;  %v462_v53 = vstv %s1116_s15  ;;  %v480_v55 = vmul.f32 %v479_v23, %v412_v20 }
  0x8a   :  { %v458_v51 = vadd.f32 %v457_v60, %v455_v47  ;;  %v485_v61 = vstv %s596_s16  ;;  %v488_v28 = vstv %s1152_s6 }
  0x8b   :  { %v438_v52 = vmax.f32 %v437_v8, 0.0  ;;  %v475_v54 = vadd.f32 %v474_v46, %v472_v24 }
  0x8c   :  { %v461_v57 = vadd.f32 %v460_v7, %v458_v51 }
  0x8d   :  { %v478_v58 = vadd.f32 %v477_v50, %v475_v54  ;;  %v483_v59 = vmul.f32 %v482_v12, %v438_v52 }
  0x8e   :  { %v463_v10 = vadd.f32 %v462_v53, %v461_v57 }
  0x8f   :  { %v481_v27 = vadd.f32 %v480_v55, %v478_v58 }
  0x90   :  { %v464_v62 = vmax.f32 %v463_v10, 0.0 }
  0x91   :  { %v484_v16 = vadd.f32 %v483_v59, %v481_v27 }
  0x92   :  { %v486_v63 = vmul.f32 %v485_v61, %v464_v62 }
  0x94   :  { %v487_v43 = vadd.f32 %v486_v63, %v484_v16 }
  0x96   :  { %v489_v0 = vadd.f32 %v488_v28, %v487_v43 }
  0x98   :  { %490 = vst [vmem:[%s1153_s7] sm:$0xff] %v489_v0 }
  0x99   :  { %495 = vsyncpa [#allocation4], 1 }
  0x9a   :  { %496 = vsyncpa [#allocation6], 1 }
  0x9b   :  { %497 = vsyncpa [#allocation9], 1 }

</bundles_post_ra>
